<compile_context>
chip_gen: v7x
topology: tpu7x:2x2x1
jax: 0.10.0
libtpu: 0.0.40
codegen_flags: <defaults>
</compile_context>

<pallas_src>
import functools

import jax
import jax.numpy as jnp
from jax.experimental import pallas as pl
from jax.experimental.pallas import tpu as pltpu


# ---------------------------------------------------------------------------
# Stage 1: wh = x @ W (bf16 out), s1 = wh.a1 (N,1), s2 = wh.a2 (1,N)
# ---------------------------------------------------------------------------
def _wh_kernel(x_ref, w_ref, a1_ref, a2_ref, wh_ref, s1_ref, s2_ref):
    wh = jnp.dot(x_ref[...], w_ref[...], preferred_element_type=jnp.float32)
    # s1[i] = a1 . wh_i -> (tm, 1): VPU mul + lane reduce (keeps MXU free).
    s1_ref[...] = jnp.sum(wh * a1_ref[...], axis=-1, keepdims=True)
    # s2[i] = a2 . wh_i emitted lane-dense as (1, tm) (once per row block).
    s2_ref[...] = jax.lax.dot_general(a2_ref[...], wh, (((1,), (1,)), ((), ())),
                                      preferred_element_type=jnp.float32)
    wh_ref[...] = wh.astype(wh_ref.dtype)


# ---------------------------------------------------------------------------
# Stage 2: flash-style masked attention aggregation
# ---------------------------------------------------------------------------
def _attn_kernel(nnz_ref, s1_ref, s2_ref, wh_ref, adj_ref, out_ref,
                 acc_ref, rs_ref, *, alpha, apply_elu):
    i = pl.program_id(0)
    j = pl.program_id(1)

    @pl.when(j == 0)
    def _():
        acc_ref[...] = jnp.zeros_like(acc_ref)
        rs_ref[...] = jnp.zeros_like(rs_ref)

    # Skip all compute for (i, j) tiles with no edges (block sparsity).
    @pl.when(nnz_ref[i, j] > 0)
    def _():
        score = s1_ref[...] + s2_ref[...]                       # (tm,1)+(1,tn)
        lrelu = jnp.where(score > 0, score, alpha * score)      # LeakyReLU
        e = jnp.where(adj_ref[...] != 0, jnp.exp(-lrelu), 0.0)  # mask non-edges
        rs_ref[...] += jnp.sum(e, axis=-1, keepdims=True)       # e_rowsum partial
        # bf16 operands into the MXU, f32 accumulation.
        acc_ref[...] += jnp.dot(e.astype(jnp.bfloat16), wh_ref[...],
                                preferred_element_type=jnp.float32)

    @pl.when(j == pl.num_programs(1) - 1)
    def _():
        rs = rs_ref[...]
        inv = pl.reciprocal(rs, approx=True)      # EUP slot
        inv = inv * (2.0 - rs * inv)              # Newton step -> f32 accuracy
        hp = acc_ref[...] * inv
        if apply_elu:                             # concat=True -> ELU(alpha=1)
            hp = jnp.where(hp > 0, hp, jnp.expm1(hp))
        out_ref[...] = hp.astype(out_ref.dtype)


# ---------------------------------------------------------------------------
# Helpers
# ---------------------------------------------------------------------------
def _round_up(x, m):
    return (x + m - 1) // m * m


def _pick_tile(n_pad, pref, want_multi=False):
    """Largest multiple of 128 that divides n_pad, <= pref; optionally keep
    at least 2 blocks along this axis (v7x megacore)."""
    cands = [t for t in range(128, n_pad + 1, 128) if n_pad % t == 0]
    ok = [t for t in cands if t <= pref] or [cands[0]]
    if want_multi:
        multi = [t for t in ok if n_pad // t >= 2]
        if multi:
            return max(multi)
    return max(ok)


# ---------------------------------------------------------------------------
# Wrapper
# ---------------------------------------------------------------------------
def sp_graph_attention_layer(x, adj, W, a, *, alpha=0.2, concat=True,
                             block_m=512, block_n=512):
    """Pallas forward of SpGraphAttentionLayer (inference)."""
    N, in_features = x.shape
    out_features = W.shape[1]
    assert a.shape == (1, 2 * out_features)
    assert adj.shape == (N, N)

    a1 = a[:, :out_features]
    a2 = a[:, out_features:]

    # Zero-pad N up to a 128 multiple (never fall back to full-N blocks).
    N_pad = _round_up(N, 128)
    tm = _pick_tile(N_pad, block_m, want_multi=True)   # i axis: >=2 blocks
    tn = _pick_tile(N_pad, block_n)
    if N_pad != N:
        x = jnp.pad(x, ((0, N_pad - N), (0, 0)))
        adj = jnp.pad(adj, ((0, N_pad - N), (0, N_pad - N)))
    gm, gn = N_pad // tm, N_pad // tn

    # -------- stage 1: wh (bf16), s1 (N,1), s2 (1,N), computed once ----------
    wh, s1, s2 = pl.pallas_call(
        _wh_kernel,
        out_shape=(
            jax.ShapeDtypeStruct((N_pad, out_features), jnp.bfloat16),
            jax.ShapeDtypeStruct((N_pad, 1), jnp.float32),
            jax.ShapeDtypeStruct((1, N_pad), jnp.float32),
        ),
        grid=(gm,),
        in_specs=[
            pl.BlockSpec((tm, in_features), lambda i: (i, 0)),
            pl.BlockSpec((in_features, out_features), lambda i: (0, 0)),
            pl.BlockSpec((1, out_features), lambda i: (0, 0)),
            pl.BlockSpec((1, out_features), lambda i: (0, 0)),
        ],
        out_specs=(
            pl.BlockSpec((tm, out_features), lambda i: (i, 0)),
            pl.BlockSpec((tm, 1), lambda i: (i, 0)),
            pl.BlockSpec((1, tm), lambda i: (0, i)),
        ),
        compiler_params=pltpu.CompilerParams(
            dimension_semantics=("parallel",)),
    )(x, W, a1, a2)

    # Per-tile nonzero counts (scalar-prefetched) -> skip empty (i,j) tiles.
    tile_nnz = (adj != 0).astype(jnp.int32).reshape(gm, tm, gn, tn).sum(axis=(1, 3))

    # -------- stage 2: flash-style masked attention over (i, j) tiles --------
    kernel = functools.partial(_attn_kernel, alpha=alpha, apply_elu=concat)
    cost = pl.CostEstimate(
        flops=2 * N_pad * N_pad * out_features,
        transcendentals=N_pad * N_pad,
        bytes_accessed=int(N_pad * N_pad * adj.dtype.itemsize
                           + gm * N_pad * out_features * 2      # wh re-streams
                           + N_pad * out_features * 4),         # output
    )
    out = pl.pallas_call(
        kernel,
        out_shape=jax.ShapeDtypeStruct((N_pad, out_features), jnp.float32),
        grid_spec=pltpu.PrefetchScalarGridSpec(
            num_scalar_prefetch=1,
            grid=(gm, gn),                      # j (reduction) innermost
            in_specs=[
                pl.BlockSpec((tm, 1), lambda i, j, nnz: (i, 0)),            # s1
                pl.BlockSpec((1, tn), lambda i, j, nnz: (0, j)),            # s2
                pl.BlockSpec((tn, out_features), lambda i, j, nnz: (j, 0)),  # wh
                pl.BlockSpec((tm, tn), lambda i, j, nnz: (i, j)),           # adj
            ],
            out_specs=pl.BlockSpec((tm, out_features),
                                   lambda i, j, nnz: (i, 0)),
            scratch_shapes=[
                pltpu.VMEM((tm, out_features), jnp.float32),   # h_prime acc
                pltpu.VMEM((tm, 1), jnp.float32),              # e_rowsum acc
            ],
        ),
        compiler_params=pltpu.CompilerParams(
            dimension_semantics=("parallel", "arbitrary"),
            # Explicit budget: fits v7x's 64 MiB physical VMEM with headroom.
            vmem_limit_bytes=48 * 1024 * 1024),
        cost_estimate=cost,
    )(tile_nnz, s1, s2, wh, adj)

    return out[:N] if N_pad != N else out


# ---------------------------------------------------------------------------
# Pure-JAX reference + deterministic init
# ---------------------------------------------------------------------------
def _reference(x, adj, W, a, alpha=0.2):
    wh = x @ W
    fo = W.shape[1]
    s1 = wh @ a[0, :fo]
    s2 = wh @ a[0, fo:]
    score = s1[:, None] + s2[None, :]
    lrelu = jnp.where(score > 0, score, alpha * score)
    e = jnp.where(adj != 0, jnp.exp(-lrelu), 0.0)
    rowsum = e.sum(-1, keepdims=True)
    hp = (e @ wh) / rowsum
    return jnp.where(hp > 0, hp, jnp.expm1(hp))


def _xavier_normal(key, shape, gain):
    fan_in, fan_out = shape[0], shape[1]
    std = gain * jnp.sqrt(2.0 / (fan_in + fan_out))
    return std * jax.random.normal(key, shape, dtype=jnp.float32)


if __name__ == "__main__":
    N = 512             # number of nodes
    in_features = 32
    out_features = 128  # multiple of 128 -> lane-dense output stores
    alpha = 0.2         # LeakyReLU negative slope

    key = jax.random.PRNGKey(0)
    kx, kadj, kw, ka = jax.random.split(key, 4)

    x = jax.random.normal(kx, (N, in_features), dtype=jnp.float32)

    # random sparse-ish adjacency (native f32) + self loops (rowsum > 0).
    adj = (jax.random.uniform(kadj, (N, N)) < 0.10).astype(jnp.float32)
    adj = adj.at[:256, 256:].set(0.0)          # one fully-empty (i,j) tile
    adj = jnp.maximum(adj, jnp.eye(N, dtype=jnp.float32))

    # deterministic parameter init, matching nn.init.xavier_normal_(gain=1.414)
    W = _xavier_normal(kw, (in_features, out_features), gain=1.414)
    a = _xavier_normal(ka, (1, 2 * out_features), gain=1.414)

    out = sp_graph_attention_layer(x, adj, W, a, alpha=alpha, concat=True,
                                   block_m=512, block_n=256)   # grid (2, 2)
    out = jax.block_until_ready(out)

    ref = _reference(x, adj, W, a, alpha=alpha)
    assert out.shape == (N, out_features)
    assert bool(jnp.all(jnp.isfinite(out)))
    # bf16 on the e @ wh MXU path -> relaxed tolerance vs the f32 reference.
    assert jnp.allclose(out, ref, atol=2e-2, rtol=2e-2), float(
        jnp.max(jnp.abs(out - ref)))

    print("KERNEL_OK")
</pallas_src>

<mosaic_0001>
module attributes {stable_mosaic.version = 11 : i64} {
  func.func @_wh_kernel(%arg0: i32, %arg1: memref<256x32xf32, #tpu.memory_space<vmem>>, %arg2: memref<32x128xf32, #tpu.memory_space<vmem>>, %arg3: memref<1x128xf32, #tpu.memory_space<vmem>>, %arg4: memref<1x128xf32, #tpu.memory_space<vmem>>, %arg5: memref<256x128xbf16, #tpu.memory_space<vmem>>, %arg6: memref<256x1xf32, #tpu.memory_space<vmem>>, %arg7: memref<1x256xf32, #tpu.memory_space<vmem>>) attributes {dimension_semantics = [#tpu.dimension_semantics<parallel>], iteration_bounds = array<i64: 2>, scalar_prefetch = 0 : i64, scratch_operands = 0 : i64, tpu.core_type = #tpu.core_type<tc>, window_params = [{transform_indices = @transform_0, window_bounds = array<i64: 256, 32>}, {pipeline_mode = #tpu.pipeline_mode<synchronous>, transform_indices = @transform_1, window_bounds = array<i64: 32, 128>}, {pipeline_mode = #tpu.pipeline_mode<synchronous>, transform_indices = @transform_2, window_bounds = array<i64: 1, 128>}, {pipeline_mode = #tpu.pipeline_mode<synchronous>, transform_indices = @transform_3, window_bounds = array<i64: 1, 128>}, {transform_indices = @transform_4, window_bounds = array<i64: 256, 128>}, {transform_indices = @transform_5, window_bounds = array<i64: 256, 1>}, {transform_indices = @transform_6, window_bounds = array<i64: 1, 256>}]} {
    %c0 = arith.constant 0 : index
    %c0_0 = arith.constant 0 : index
    %0 = vector.load %arg1[%c0, %c0_0] : memref<256x32xf32, #tpu.memory_space<vmem>>, vector<256x32xf32>
    %c0_1 = arith.constant 0 : index
    %c0_2 = arith.constant 0 : index
    %1 = vector.load %arg2[%c0_1, %c0_2] : memref<32x128xf32, #tpu.memory_space<vmem>>, vector<32x128xf32>
    %cst = arith.constant dense<0.000000e+00> : vector<256x128xf32>
    %2 = tpu.matmul %0, %1, %cst {dimension_numbers = #tpu.dot_dimension_numbers<[1], [0], [0], [1], [0, 0, 1, 1], [], []>} : vector<256x32xf32>, vector<32x128xf32>, vector<256x128xf32> -> vector<256x128xf32>
    %c0_3 = arith.constant 0 : index
    %c0_4 = arith.constant 0 : index
    %3 = vector.load %arg3[%c0_3, %c0_4] : memref<1x128xf32, #tpu.memory_space<vmem>>, vector<1x128xf32>
    %4 = vector.broadcast %3 : vector<1x128xf32> to vector<256x128xf32>
    %5 = arith.mulf %2, %4 : vector<256x128xf32>
    %cst_5 = arith.constant dense<0.000000e+00> : vector<256xf32>
    %6 = vector.multi_reduction <add>, %5, %cst_5 [1] : vector<256x128xf32> to vector<256xf32>
    %7 = vector.shape_cast %6 : vector<256xf32> to vector<256x1xf32>
    %c0_6 = arith.constant 0 : index
    %c0_7 = arith.constant 0 : index
    %8 = vector.load %arg6[%c0_6, %c0_7] : memref<256x1xf32, #tpu.memory_space<vmem>>, vector<256x1xf32>
    tpu.vector_store %arg6[%c0_6, %c0_7], %7 {strides = array<i32>} : memref<256x1xf32, #tpu.memory_space<vmem>>, vector<256x1xf32>,
    %c0_8 = arith.constant 0 : index
    %c0_9 = arith.constant 0 : index
    %9 = vector.load %arg4[%c0_8, %c0_9] : memref<1x128xf32, #tpu.memory_space<vmem>>, vector<1x128xf32>
    %cst_10 = arith.constant dense<0.000000e+00> : vector<1x256xf32>
    %10 = tpu.matmul %9, %2, %cst_10 {dimension_numbers = #tpu.dot_dimension_numbers<[1], [1], [0], [0], [0, 0, 1, 0], [], []>} : vector<1x128xf32>, vector<256x128xf32>, vector<1x256xf32> -> vector<1x256xf32>
    %c0_11 = arith.constant 0 : index
    %c0_12 = arith.constant 0 : index
    %11 = vector.load %arg7[%c0_11, %c0_12] : memref<1x256xf32, #tpu.memory_space<vmem>>, vector<1x256xf32>
    tpu.vector_store %arg7[%c0_11, %c0_12], %10 {strides = array<i32>} : memref<1x256xf32, #tpu.memory_space<vmem>>, vector<1x256xf32>,
    %12 = arith.truncf %2 : vector<256x128xf32> to vector<256x128xbf16>
    %c0_13 = arith.constant 0 : index
    %c0_14 = arith.constant 0 : index
    %13 = vector.load %arg5[%c0_13, %c0_14] : memref<256x128xbf16, #tpu.memory_space<vmem>>, vector<256x128xbf16>
    tpu.vector_store %arg5[%c0_13, %c0_14], %12 {strides = array<i32>} : memref<256x128xbf16, #tpu.memory_space<vmem>>, vector<256x128xbf16>,
    return
  }
  func.func @transform_0(%arg0: i32) -> (i32, i32) {
    %c0_i32 = arith.constant 0 : i32
    %c0_i32_0 = arith.constant 0 : i32
    return %arg0, %c0_i32 : i32, i32
  }
  func.func @transform_1(%arg0: i32) -> (i32, i32) {
    %c0_i32 = arith.constant 0 : i32
    %c0_i32_0 = arith.constant 0 : i32
    %c0_i32_1 = arith.constant 0 : i32
    return %c0_i32, %c0_i32_0 : i32, i32
  }
  func.func @transform_2(%arg0: i32) -> (i32, i32) {
    %c0_i32 = arith.constant 0 : i32
    %c0_i32_0 = arith.constant 0 : i32
    %c0_i32_1 = arith.constant 0 : i32
    return %c0_i32, %c0_i32_0 : i32, i32
  }
  func.func @transform_3(%arg0: i32) -> (i32, i32) {
    %c0_i32 = arith.constant 0 : i32
    %c0_i32_0 = arith.constant 0 : i32
    %c0_i32_1 = arith.constant 0 : i32
    return %c0_i32, %c0_i32_0 : i32, i32
  }
  func.func @transform_4(%arg0: i32) -> (i32, i32) {
    %c0_i32 = arith.constant 0 : i32
    %c0_i32_0 = arith.constant 0 : i32
    return %arg0, %c0_i32 : i32, i32
  }
  func.func @transform_5(%arg0: i32) -> (i32, i32) {
    %c0_i32 = arith.constant 0 : i32
    %c0_i32_0 = arith.constant 0 : i32
    return %arg0, %c0_i32 : i32, i32
  }
  func.func @transform_6(%arg0: i32) -> (i32, i32) {
    %c0_i32 = arith.constant 0 : i32
    %c0_i32_0 = arith.constant 0 : i32
    return %c0_i32, %arg0 : i32, i32
  }
}

</mosaic_0001>

<bundles_post_ra>
// kernel: tpu_custom_call.1
= control target key start
LH: loop header
LB: loop body
LE: loop exit
PB: predicated region body
PF: predicated region fallthrough
CT: control target
= control target key end

     0   :  { %12 = vsyncpa [#allocation3], 0  ;;  %s2138_s0 = inlined_call_operand.vmem [shape: f32[512,32], index: 0, kind: input, shape index: {}]   ;;  %s2139_s1 = inlined_call_operand.vmem [shape: f32[32,128], index: 1, kind: input, shape index: {}]   ;;  %s2140_s2 = inlined_call_operand.vmem [shape: f32[1,128], index: 2, kind: input, shape index: {}]   ;;  %s2141_s3 = inlined_call_operand.vmem [shape: f32[1,128], index: 3, kind: input, shape index: {}]   ;;  %s2142_s4 = inlined_call_operand.hbm [shape: bf16[512,128], index: 4, kind: output, shape index: {0}]   ;;  %s2143_s5 = inlined_call_operand.vmem [shape: f32[512,1], index: 5, kind: output, shape index: {1}]   ;;  %s2144_s6 = inlined_call_operand.hbm [shape: f32[1,512], index: 6, kind: output, shape index: {2}]  }
   0x1   :  { %14 = vsyncpa [#allocation3 + $0x1], 0 }
   0x2   :  { %15 = vsyncpa [#allocation5], 0 }
   0x3   :  { %17 = vsyncpa [#allocation5 + $0x1], 0  ;;  %s1749_s21 = smov 0   ;;  %s1751_s22 = smov 0  }
   0x4   :  { %s1753_s23 = smov 0   ;;  %s1755_s24 = smov 0  }
   0x5 LB: > { %s1770_s25 = sadd.s32 4294967295, %s1707_s24   ;;  %s1188_s26 = sadd.s32 4294967294, %s1707_s24   ;;  %s1707_s24 = sphi %s1755_s24, %s2150_s24   ;;  %s1703_s23 = sphi %s1753_s23, %s2149_s23   ;;  %s1699_s22 = sphi %s1751_s22, %s2148_s22   ;;  %s1695_s21 = sphi %s1749_s21, %s2147_s21  }
   0x6   : > { %s1774_s27 = sadd.s32 1, %s1707_s24   ;;  %s119_s28 = sadd.s32 1, %s1703_s23 }
   0x7   : > { %s116_s29 = ssub.s32 %s1707_s24, %s1774_s27  ;;  %p129_p0 = scmp.ne.s32.totalorder %s1703_s23, %s1699_s22 }
   0x8   : > { %p117_p1 = scmp.eq.s32.totalorder %s116_s29, 0  ;;  %p130_p2 = scmp.eq.s32.totalorder %s1770_s25, 1 }
   0x9   : > { %p135_p3 = scmp.ne.s32.totalorder %s1699_s22, %s1695_s21  ;;  %p136_p4 = scmp.eq.s32.totalorder %s1188_s26, 1 }
   0xa   : > { %s1785_s30 = scalar_select %p117_p1, %s1703_s23, %s119_s28  }
   0xb   : > { %p1787_p5 = por %p130_p2, %p129_p0  ;;  %p1791_p6 = por %p136_p4, %p135_p3 }
   0xc   : > { %p1191_p7 = scmp.ge.s32.totalorder %s1707_s24, 1  ;;  %p224_p8 = scmp.lt.s32.totalorder %s1707_s24, 3 }
   0xe   : > { %p225_p9 = pnand %p1191_p7, %p224_p8 }
   0xf   : > { %v310_v0 = vld [vmem:[%s2139_s1] sm:$0xff] (!%p225_p9)  ;;  %v311_v1 = vld [vmem:[%s2139_s1 + $0x8] sm:$0xff] (!%p225_p9)  ;;  %v312_v2 = vld [vmem:[%s2139_s1 + $0x10] sm:$0xff] (!%p225_p9)  ;;  %s1807_s15 = sshll.u32 (!%p225_p9), %s1770_s25, 5  ;;  %vm314_vm0 = vcmask (!%p225_p9), 261120   ;;  %s1895_s10 = sand.u32 (!%p225_p9), 1, %s1699_s22  }
  0x10   : > { %228 = sbr.rel (%p225_p9) target bundleno = 573 (0x23d), region = 36  ;;  %v1526_v3 = vpack.c.bf16 (!%p225_p9), %v311_v1, %v310_v0  ;;  %v313_v4 = vld [vmem:[%s2139_s1 + $0x18] sm:$0xff] (!%p225_p9)  ;;  %p265_p10 = scmp.lt.s32.totalorder (!%p225_p9), %s1807_s15, 63  ;;  %v1891_v38 = vld [vmem:[%s2141_s3] sm:$0x1] (!%p225_p9)  ;;  %vm739_vm1 = vcmask (!%p225_p9), 7168  }
  0x11   : > { %v1530_v5 = vpack.c.bf16 (!%p225_p9), %v313_v4, %v312_v2  ;;  %1468 = vmatprep.mubr.f32.mxu1 (!%p225_p9), %v1891_v38  ;;  %v1900_v39 = vld [vmem:[%s2140_s2] ss:$0 sm:$0xff] (!%p225_p9)  ;;  %s1192_s13 = sshll.u32 (!%p225_p9), %s1895_s10, 7  ;;  %s1028_s9 = scalar_lea.sflag (!%p225_p9), [#allocation3], %s1895_s10 }
  0x12   : > { %1527 = vmatprep.subr.bf16.mxu0 (!%p225_p9), %v1526_v3  ;;  %s1906_s14 = scalar_lea.vmem (!%p225_p9), [#allocation2], %s1192_s13 }
  0x13   : > { %1529 = vmatpush3.bf16.msra.mxu0 (!%p225_p9), %v1526_v3 }
  0x14   : > { %1531 = vmatprep.subr.bf16.mxu0 (!%p225_p9), %v1530_v5 }
  0x17   : > { %s1814_s18 = scalar_select %p265_p10, %s1807_s15, 63  ;;  %1533 = vmatpush3.bf16.msra.mxu0 %v1530_v5 }
  0x19   : > { %s1195_s19 = sshll.u32 %s1814_s18, 3  ;;  %s1303_s18 = sshll.u32 %s1770_s25, 11 }
  0x1a   : > { %s1822_s28 = scalar_lea.vmem %s2138_s0, %s1195_s19  ;;  %s1991_s20 = scalar_lea.vmem %s2143_s5, %s1195_s19 }
  0x1b   : > { %v278_v6 = vld [vmem:[%s1822_s28] sm:$0xff]  ;;  %v279_v7 = vld [vmem:[%s1822_s28 + $0x8] sm:$0xff]  ;;  %v280_v8 = vld [vmem:[%s1822_s28 + $0x10] sm:$0xff]  ;;  %s1051_s19 = sshll.u32 %s1906_s14, 4  ;;  %s2044_s29 = scalar_lea.hbm %s2142_s4, %s1303_s18  ;;  %s2046_s19 = int_to_ptr.vmem [resolvable:$true] %s1051_s19 }
  0x1c   : > { %1478 = vmatprep.mubr.msk.f32.mxu0 %vm314_vm0, %v278_v6  ;;  %v281_v9 = vld [vmem:[%s1822_s28 + $0x18] sm:$0xff]  ;;  %v282_v10 = vld [vmem:[%s1822_s28 + $0x20] sm:$0xff]  ;;  %v283_v11 = vld [vmem:[%s1822_s28 + $0x28] sm:$0xff]  ;;  %s1613_s11 = scalar_lea.vmem %s2046_s19, 2048  ;;  %s1709_s25 = smov [#allocation2]  }
  0x1d   : > { %1479 = vmatmul.mubr.msk.f32.vlgmr.msra.gmra.mrb[0].mxu0 %vm314_vm0, %v279_v7  ;;  %v284_v12 = vld [vmem:[%s1822_s28 + $0x30] sm:$0xff]  ;;  %v285_v13 = vld [vmem:[%s1822_s28 + $0x38] sm:$0xff]  ;;  %v286_v14 = vld [vmem:[%s1822_s28 + $0x40] sm:$0xff]  ;;  %p1614_p11 = scmp.ne.s32.totalorder %s2046_s19, %s1613_s11  ;;  %s1617_s12 = sshll.u32 %s1709_s25, 4  ;;  %s1618_s12 = int_to_ptr.vmem [resolvable:$false] %s1617_s12 }
  0x1e   : > { %1481 = vmatprep.mubr.msk.f32.mxu0 %vm314_vm0, %v280_v8  ;;  %v287_v15 = vld [vmem:[%s1822_s28 + $0x48] sm:$0xff]  ;;  %v288_v16 = vld [vmem:[%s1822_s28 + $0x50] sm:$0xff]  ;;  %v289_v17 = vld [vmem:[%s1822_s28 + $0x58] sm:$0xff]  ;;  %s1619_s13 = scalar_lea.vmem %s1618_s12, 4096  ;;  %p1620_p0 = scmp.lt.s32.totalorder %s2046_s19, %s1618_s12 }
  0x1f   : > { %v290_v18 = vld [vmem:[%s1822_s28 + $0x60] sm:$0xff]  ;;  %v291_v19 = vld [vmem:[%s1822_s28 + $0x68] sm:$0xff]  ;;  %v292_v20 = vld [vmem:[%s1822_s28 + $0x70] sm:$0xff]  ;;  %p1615_p12 = pnand %p1614_p11, %p1787_p5  ;;  %p1621_p1 = scmp.lt.s32.totalorder %s1619_s13, %s1613_s11 }
  0x20   : > { %v293_v21 = vld [vmem:[%s1822_s28 + $0x78] sm:$0xff]  ;;  %v294_v22 = vld [vmem:[%s1822_s28 + $0x80] sm:$0xff]  ;;  %v295_v23 = vld [vmem:[%s1822_s28 + $0x88] sm:$0xff] }
  0x21   : > { %1482 = vmatmul.mubr.msk.f32.gmra.mrb[2].mxu0 %vm314_vm0, %v281_v9  ;;  %v296_v24 = vld [vmem:[%s1822_s28 + $0x90] sm:$0xff]  ;;  %v297_v25 = vld [vmem:[%s1822_s28 + $0x98] sm:$0xff]  ;;  %v298_v26 = vld [vmem:[%s1822_s28 + $0xa0] sm:$0xff]  ;;  %p1616_p13 = pneg %p1615_p12  ;;  %p1622_p2 = por %p1621_p1, %p1620_p0 }
  0x22   : > { %1484 = vmatprep.mubr.msk.f32.mxu0 %vm314_vm0, %v282_v10  ;;  %v299_v27 = vld [vmem:[%s1822_s28 + $0xa8] sm:$0xff]  ;;  %v300_v28 = vld [vmem:[%s1822_s28 + $0xb0] sm:$0xff]  ;;  %v301_v29 = vld [vmem:[%s1822_s28 + $0xb8] sm:$0xff] }
  0x23   : > { %v302_v30 = vld [vmem:[%s1822_s28 + $0xc0] sm:$0xff]  ;;  %v303_v31 = vld [vmem:[%s1822_s28 + $0xc8] sm:$0xff]  ;;  %v304_v32 = vld [vmem:[%s1822_s28 + $0xd0] sm:$0xff]  ;;  %p1623_p3 = pnand %p1622_p2, %p1616_p13 }
  0x24   : > { %v305_v33 = vld [vmem:[%s1822_s28 + $0xd8] sm:$0xff]  ;;  %v306_v34 = vld [vmem:[%s1822_s28 + $0xe0] sm:$0xff]  ;;  %v307_v35 = vld [vmem:[%s1822_s28 + $0xe8] sm:$0xff] }
  0x25   : > { %1485 = vmatmul.mubr.msk.f32.gmra.mrb[4].mxu0 %vm314_vm0, %v283_v11  ;;  %v308_v36 = vld [vmem:[%s1822_s28 + $0xf0] sm:$0xff]  ;;  %v309_v37 = vld [vmem:[%s1822_s28 + $0xf8] sm:$0xff] }
  0x26   : > { %1487 = vmatprep.mubr.msk.f32.mxu0 %vm314_vm0, %v284_v12 }
  0x29   : > { %1488 = vmatmul.mubr.msk.f32.gmra.mrb[6].mxu0 %vm314_vm0, %v285_v13 }
  0x2a   : > { %1490 = vmatprep.mubr.msk.f32.mxu0 %vm314_vm0, %v286_v14 }
  0x2d   : > { %1491 = vmatmul.mubr.msk.f32.gmra.mrb[8].mxu0 %vm314_vm0, %v287_v15 }
  0x2e   : > { %1493 = vmatprep.mubr.msk.f32.mxu0 %vm314_vm0, %v288_v16 }
  0x31   : > { %1494 = vmatmul.mubr.msk.f32.gmra.mrb[10].mxu0 %vm314_vm0, %v289_v17 }
  0x32   : > { %1496 = vmatprep.mubr.msk.f32.mxu0 %vm314_vm0, %v290_v18 }
  0x35   : > { %1497 = vmatmul.mubr.msk.f32.gmra.mrb[12].mxu0 %vm314_vm0, %v291_v19 }
  0x36   : > { %1499 = vmatprep.mubr.msk.f32.mxu0 %vm314_vm0, %v292_v20 }
  0x39   : > { %1500 = vmatmul.mubr.msk.f32.gmra.mrb[14].mxu0 %vm314_vm0, %v293_v21 }
  0x3a   : > { %1502 = vmatprep.mubr.msk.f32.mxu0 %vm314_vm0, %v294_v22 }
  0x3d   : > { %1503 = vmatmul.mubr.msk.f32.gmra.mrb[16].mxu0 %vm314_vm0, %v295_v23 }
  0x3e   : > { %1505 = vmatprep.mubr.msk.f32.mxu0 %vm314_vm0, %v296_v24 }
  0x41   : > { %1506 = vmatmul.mubr.msk.f32.gmra.mrb[18].mxu0 %vm314_vm0, %v297_v25 }
  0x42   : > { %1508 = vmatprep.mubr.msk.f32.mxu0 %vm314_vm0, %v298_v26 }
  0x45   : > { %1509 = vmatmul.mubr.msk.f32.gmra.mrb[20].mxu0 %vm314_vm0, %v299_v27 }
  0x46   : > { %1511 = vmatprep.mubr.msk.f32.mxu0 %vm314_vm0, %v300_v28 }
  0x49   : > { %1512 = vmatmul.mubr.msk.f32.gmra.mrb[22].mxu0 %vm314_vm0, %v301_v29 }
  0x4a   : > { %1514 = vmatprep.mubr.msk.f32.mxu0 %vm314_vm0, %v302_v30 }
  0x4d   : > { %1515 = vmatmul.mubr.msk.f32.gmra.mrb[24].mxu0 %vm314_vm0, %v303_v31 }
  0x4e   : > { %1517 = vmatprep.mubr.msk.f32.mxu0 %vm314_vm0, %v304_v32 }
  0x51   : > { %1518 = vmatmul.mubr.msk.f32.gmra.mrb[26].mxu0 %vm314_vm0, %v305_v33 }
  0x52   : > { %1520 = vmatprep.mubr.msk.f32.mxu0 %vm314_vm0, %v306_v34 }
  0x55   : > { %1521 = vmatmul.mubr.msk.f32.gmra.mrb[28].mxu0 %vm314_vm0, %v307_v35 }
  0x56   : > { %1523 = vmatprep.mubr.msk.f32.mxu0 %vm314_vm0, %v308_v36 }
  0x59   : > { %1524 = vmatmul.mubr.msk.f32.gmra.mrb[30].mxu0 %vm314_vm0, %v309_v37 }
  0xf0   : > { %v1480_v40 = vpop.f32.mrb[0].mxu0 }
  0xf1   : > { %v477_v41 = vpop.f32.mrb[1].mxu0  ;;  %v644_v42 = vmul.f32 %v1480_v40, %v1900_v39 }
  0xf2   : > { %v1904_v43 = vpack.c.bf16 %v1480_v40, %v477_v41  ;;  %v643_v46 = vmul.f32 %v1900_v39, %v477_v41 }
  0xf3   : > { %677 = vadd.xlane.f32.xlu0 %v644_v42 }
  0xf4   : > { %v1483_v44 = vpop.f32.mrb[2].mxu0  ;;  %1309 = vst [vmem:[%s1906_s14] sm:$0xff] %v1904_v43  }
  0xf5   : > { %v487_v45 = vpop.f32.mrb[3].mxu0  ;;  %v646_v47 = vmul.f32 %v1483_v44, %v1900_v39 }
  0xf6   : > { %v1912_v48 = vpack.c.bf16 %v1483_v44, %v487_v45  ;;  %v645_v51 = vmul.f32 %v1900_v39, %v487_v45 }
  0xf7   : > { %675 = vadd.xlane.f32.xlu0 %v643_v46  ;;  %681 = vadd.xlane.f32.xlu1 %v646_v47 }
  0xf8   : > { %1385 = vst [vmem:[%s1906_s14 + $0x8] sm:$0xff] %v1912_v48   ;;  %v1486_v49 = vpop.f32.mrb[4].mxu0 }
  0xf9   : > { %v497_v50 = vpop.f32.mrb[5].mxu0  ;;  %v648_v56 = vmul.f32 %v1486_v49, %v1900_v39 }
  0xfa   : > { %v1917_v52 = vpack.c.bf16 %v1486_v49, %v497_v50  ;;  %v647_v53 = vmul.f32 %v1900_v39, %v497_v50 }
  0xfb   : > { %679 = vadd.xlane.f32.xlu1 %v645_v51 }
  0xfc   : > { %1386 = vst [vmem:[%s1906_s14 + $0x10] sm:$0xff] %v1917_v52   ;;  %683 = vadd.xlane.f32.xlu0 %v647_v53  ;;  %v1489_v54 = vpop.f32.mrb[6].mxu0 }
  0xfd   : > { %v507_v55 = vpop.f32.mrb[7].mxu0  ;;  %v650_v61 = vmul.f32 %v1489_v54, %v1900_v39 }
  0xfe   : > { %v1923_v57 = vpack.c.bf16 %v1489_v54, %v507_v55  ;;  %v649_v58 = vmul.f32 %v1900_v39, %v507_v55 }
  0xff   : > { %685 = vadd.xlane.f32.xlu1 %v648_v56 }
 0x100   : > { %1387 = vst [vmem:[%s1906_s14 + $0x18] sm:$0xff] %v1923_v57   ;;  %687 = vadd.xlane.f32.xlu0 %v649_v58  ;;  %v1492_v59 = vpop.f32.mrb[8].mxu0 }
 0x101   : > { %v517_v60 = vpop.f32.mrb[9].mxu0  ;;  %v652_v2 = vmul.f32 %v1492_v59, %v1900_v39 }
 0x102   : > { %v1929_v62 = vpack.c.bf16 %v1492_v59, %v517_v60  ;;  %v651_v63 = vmul.f32 %v1900_v39, %v517_v60 }
 0x103   : > { %689 = vadd.xlane.f32.xlu1 %v650_v61 }
 0x104   : > { %1388 = vst [vmem:[%s1906_s14 + $0x20] sm:$0xff] %v1929_v62   ;;  %691 = vadd.xlane.f32.xlu0 %v651_v63  ;;  %v1495_v0 = vpop.f32.mrb[10].mxu0 }
 0x105   : > { %v527_v1 = vpop.f32.mrb[11].mxu0  ;;  %v654_v7 = vmul.f32 %v1495_v0, %v1900_v39 }
 0x106   : > { %v1935_v3 = vpack.c.bf16 %v1495_v0, %v527_v1  ;;  %v653_v4 = vmul.f32 %v1900_v39, %v527_v1 }
 0x107   : > { %693 = vadd.xlane.f32.xlu1 %v652_v2 }
 0x108   : > { %1389 = vst [vmem:[%s1906_s14 + $0x28] sm:$0xff] %v1935_v3   ;;  %695 = vadd.xlane.f32.xlu0 %v653_v4  ;;  %v1498_v5 = vpop.f32.mrb[12].mxu0 }
 0x109   : > { %v537_v6 = vpop.f32.mrb[13].mxu0  ;;  %v656_v12 = vmul.f32 %v1498_v5, %v1900_v39 }
 0x10a   : > { %v1941_v8 = vpack.c.bf16 %v1498_v5, %v537_v6  ;;  %v655_v9 = vmul.f32 %v1900_v39, %v537_v6 }
 0x10b   : > { %697 = vadd.xlane.f32.xlu1 %v654_v7 }
 0x10c   : > { %1390 = vst [vmem:[%s1906_s14 + $0x30] sm:$0xff] %v1941_v8   ;;  %699 = vadd.xlane.f32.xlu0 %v655_v9  ;;  %v1501_v10 = vpop.f32.mrb[14].mxu0 }
 0x10d   : > { %v547_v11 = vpop.f32.mrb[15].mxu0  ;;  %v658_v17 = vmul.f32 %v1501_v10, %v1900_v39 }
 0x10e   : > { %v1947_v13 = vpack.c.bf16 %v1501_v10, %v547_v11  ;;  %v657_v14 = vmul.f32 %v1900_v39, %v547_v11 }
 0x10f   : > { %701 = vadd.xlane.f32.xlu1 %v656_v12 }
 0x110   : > { %1391 = vst [vmem:[%s1906_s14 + $0x38] sm:$0xff] %v1947_v13   ;;  %703 = vadd.xlane.f32.xlu0 %v657_v14  ;;  %v1504_v15 = vpop.f32.mrb[16].mxu0 }
 0x111   : > { %v557_v16 = vpop.f32.mrb[17].mxu0  ;;  %v660_v21 = vmul.f32 %v1504_v15, %v1900_v39 }
 0x112   : > { %v1534_v18 = vpack.c.bf16 %v1504_v15, %v557_v16  ;;  %v659_v19 = vmul.f32 %v1900_v39, %v557_v16 }
 0x113   : > { %705 = vadd.xlane.f32.xlu1 %v658_v17 }
 0x114   : > { %1535 = vmatprep.subr.bf16.mxu1 %v1534_v18  ;;  %1392 = vst [vmem:[%s1906_s14 + $0x40] sm:$0xff] %v1534_v18   ;;  %707 = vadd.xlane.f32.xlu0 %v659_v19  ;;  %v1507_v20 = vpop.f32.mrb[18].mxu0 }
 0x115   : > { %1537 = vmatpush3.bf16.xpose.msra.mxu1 %v1904_v43  ;;  %v567_v22 = vpop.f32.mrb[19].mxu0  ;;  %v662_v25 = vmul.f32 %v1507_v20, %v1900_v39 }
 0x116   : > { %v1538_v23 = vpack.c.bf16 %v1507_v20, %v567_v22  ;;  %v661_v24 = vmul.f32 %v1900_v39, %v567_v22 }
 0x117   : > { %709 = vadd.xlane.f32.xlu1 %v660_v21 }
 0x118   : > { %1393 = vst [vmem:[%s1906_s14 + $0x48] sm:$0xff] %v1538_v23   ;;  %1539 = vmatprep.subr.bf16.mxu1 %v1538_v23  ;;  %711 = vadd.xlane.f32.xlu0 %v661_v24  ;;  %v1510_v26 = vpop.f32.mrb[20].mxu0 }
 0x119   : > { %v577_v27 = vpop.f32.mrb[21].mxu0  ;;  %v664_v30 = vmul.f32 %v1510_v26, %v1900_v39 }
 0x11a   : > { %v1542_v28 = vpack.c.bf16 %v1510_v26, %v577_v27  ;;  %v663_v29 = vmul.f32 %v1900_v39, %v577_v27 }
 0x11b   : > { %713 = vadd.xlane.f32.xlu1 %v662_v25 }
 0x11c   : > { %1394 = vst [vmem:[%s1906_s14 + $0x50] sm:$0xff] %v1542_v28   ;;  %715 = vadd.xlane.f32.xlu0 %v663_v29  ;;  %v1513_v31 = vpop.f32.mrb[22].mxu0 }
 0x11d   : > { %1541 = vmatpush3.bf16.xpose.msra.mxu1 %v1912_v48  ;;  %v587_v32 = vpop.f32.mrb[23].mxu0  ;;  %v666_v35 = vmul.f32 %v1513_v31, %v1900_v39 }
 0x11e   : > { %1543 = vmatprep.subr.bf16.mxu1 %v1542_v28  ;;  %v1546_v33 = vpack.c.bf16 %v1513_v31, %v587_v32  ;;  %v665_v34 = vmul.f32 %v1900_v39, %v587_v32 }
 0x11f   : > { %717 = vadd.xlane.f32.xlu1 %v664_v30 }
 0x120   : > { %1395 = vst [vmem:[%s1906_s14 + $0x58] sm:$0xff] %v1546_v33   ;;  %719 = vadd.xlane.f32.xlu0 %v665_v34  ;;  %v1516_v36 = vpop.f32.mrb[24].mxu0 }
 0x121   : > { %v597_v37 = vpop.f32.mrb[25].mxu0  ;;  %v668_v42 = vmul.f32 %v1516_v36, %v1900_v39 }
 0x122   : > { %v1550_v40 = vpack.c.bf16 %v1516_v36, %v597_v37  ;;  %v667_v41 = vmul.f32 %v1900_v39, %v597_v37 }
 0x123   : > { %721 = vadd.xlane.f32.xlu1 %v666_v35 }
 0x124   : > { %1396 = vst [vmem:[%s1906_s14 + $0x60] sm:$0xff] %v1550_v40   ;;  %723 = vadd.xlane.f32.xlu0 %v667_v41  ;;  %v1519_v43 = vpop.f32.mrb[26].mxu0 }
 0x125   : > { %1545 = vmatpush3.bf16.xpose.msra.mxu1 %v1917_v52  ;;  %v607_v44 = vpop.f32.mrb[27].mxu0  ;;  %v670_v47 = vmul.f32 %v1519_v43, %v1900_v39 }
 0x126   : > { %1547 = vmatprep.subr.bf16.mxu1 %v1546_v33  ;;  %v1554_v45 = vpack.c.bf16 %v1519_v43, %v607_v44  ;;  %v669_v46 = vmul.f32 %v1900_v39, %v607_v44 }
 0x127   : > { %725 = vadd.xlane.f32.xlu1 %v668_v42 }
 0x128   : > { %1397 = vst [vmem:[%s1906_s14 + $0x68] sm:$0xff] %v1554_v45   ;;  %727 = vadd.xlane.f32.xlu0 %v669_v46  ;;  %v1522_v48 = vpop.f32.mrb[28].mxu0 }
 0x129   : > { %v617_v49 = vpop.f32.mrb[29].mxu0  ;;  %v672_v53 = vmul.f32 %v1522_v48, %v1900_v39 }
 0x12a   : > { %v1558_v50 = vpack.c.bf16 %v1522_v48, %v617_v49  ;;  %v671_v51 = vmul.f32 %v1900_v39, %v617_v49 }
 0x12b   : > { %729 = vadd.xlane.f32.xlu1 %v670_v47 }
 0x12c   : > { %1398 = vst [vmem:[%s1906_s14 + $0x70] sm:$0xff] %v1558_v50   ;;  %731 = vadd.xlane.f32.xlu0 %v671_v51  ;;  %v1525_v52 = vpop.f32.mrb[30].mxu0 }
 0x12d   : > { %1549 = vmatpush3.bf16.xpose.msra.mxu1 %v1923_v57  ;;  %v627_v54 = vpop.f32.mrb[31].mxu0  ;;  %v674_v55 = vmul.f32 %v1525_v52, %v1900_v39 }
 0x12e   : > { %1551 = vmatprep.subr.bf16.mxu1 %v1550_v40  ;;  %v673_v56 = vmul.f32 %v1900_v39, %v627_v54  ;;  %v1562_v58 = vpack.c.bf16 %v1525_v52, %v627_v54 }
 0x12f   : > { %733 = vadd.xlane.f32.xlu1 %v672_v53 }
 0x130   : > { %1399 = vst [vmem:[%s1906_s14 + $0x78] sm:$0xff] %v1562_v58   ;;  %735 = vadd.xlane.f32.xlu0 %v673_v56 }
 0x133   : > { %737 = vadd.xlane.f32.xlu1 %v674_v55 }
 0x135   : > { %1553 = vmatpush3.bf16.xpose.msra.mxu1 %v1929_v62 }
 0x136   : > { %1555 = vmatprep.subr.bf16.mxu1 %v1554_v45 }
 0x13d   : > { %1557 = vmatpush3.bf16.xpose.msra.mxu1 %v1935_v3 }
 0x13e   : > { %1559 = vmatprep.subr.bf16.mxu1 %v1558_v50 }
 0x145   : > { %1561 = vmatpush3.bf16.xpose.msra.mxu1 %v1941_v8 }
 0x146   : > { %1563 = vmatprep.subr.bf16.mxu1 %v1562_v58 }
 0x14d   : > { %1565 = vmatpush3.bf16.xpose.msra.mxu1 %v1947_v13 }
 0x154   : > { %1469 = vmatmul.mubr.f32.vlgmr.msra.gmra.mrb[0].mxu1 %v1891_v38 }
 0x180   : > { %v678_v39 = vpop.xlane.xlu0 %677 }
 0x181   : > { %741 = vst.msk [vmem:[%s1991_s20 + $0x8] sm:$0xff] %vm739_vm1, %v678_v39 }
 0x184   : > { %v676_v38 = vpop.xlane.xlu0 %675  ;;  %v682_v57 = vpop.xlane.xlu1 %681 }
 0x185   : > { %740 = vst.msk [vmem:[%s1991_s20] sm:$0xff] %vm739_vm1, %v676_v38  ;;  %743 = vst.msk [vmem:[%s1991_s20 + $0x18] sm:$0xff] %vm739_vm1, %v682_v57 }
 0x188   : > { %v680_v59 = vpop.xlane.xlu1 %679 }
 0x189   : > { %742 = vst.msk [vmem:[%s1991_s20 + $0x10] sm:$0xff] %vm739_vm1, %v680_v59  ;;  %v684_v60 = vpop.xlane.xlu0 %683 }
 0x18a   : > { %744 = vst.msk [vmem:[%s1991_s20 + $0x20] sm:$0xff] %vm739_vm1, %v684_v60 }
 0x18c   : > { %v686_v61 = vpop.xlane.xlu1 %685 }
 0x18d   : > { %745 = vst.msk [vmem:[%s1991_s20 + $0x28] sm:$0xff] %vm739_vm1, %v686_v61  ;;  %v688_v62 = vpop.xlane.xlu0 %687 }
 0x18e   : > { %746 = vst.msk [vmem:[%s1991_s20 + $0x30] sm:$0xff] %vm739_vm1, %v688_v62 }
 0x190   : > { %v690_v63 = vpop.xlane.xlu1 %689 }
 0x191   : > { %747 = vst.msk [vmem:[%s1991_s20 + $0x38] sm:$0xff] %vm739_vm1, %v690_v63  ;;  %v692_v0 = vpop.xlane.xlu0 %691 }
 0x192   : > { %748 = vst.msk [vmem:[%s1991_s20 + $0x40] sm:$0xff] %vm739_vm1, %v692_v0 }
 0x194   : > { %v694_v1 = vpop.xlane.xlu1 %693 }
 0x195   : > { %749 = vst.msk [vmem:[%s1991_s20 + $0x48] sm:$0xff] %vm739_vm1, %v694_v1  ;;  %v696_v2 = vpop.xlane.xlu0 %695 }
 0x196   : > { %750 = vst.msk [vmem:[%s1991_s20 + $0x50] sm:$0xff] %vm739_vm1, %v696_v2 }
 0x198   : > { %v698_v3 = vpop.xlane.xlu1 %697 }
 0x199   : > { %751 = vst.msk [vmem:[%s1991_s20 + $0x58] sm:$0xff] %vm739_vm1, %v698_v3  ;;  %v700_v4 = vpop.xlane.xlu0 %699 }
 0x19a   : > { %752 = vst.msk [vmem:[%s1991_s20 + $0x60] sm:$0xff] %vm739_vm1, %v700_v4 }
 0x19c   : > { %v702_v5 = vpop.xlane.xlu1 %701 }
 0x19d   : > { %753 = vst.msk [vmem:[%s1991_s20 + $0x68] sm:$0xff] %vm739_vm1, %v702_v5  ;;  %v704_v6 = vpop.xlane.xlu0 %703 }
 0x19e   : > { %754 = vst.msk [vmem:[%s1991_s20 + $0x70] sm:$0xff] %vm739_vm1, %v704_v6 }
 0x1a0   : > { %v706_v7 = vpop.xlane.xlu1 %705 }
 0x1a1   : > { %755 = vst.msk [vmem:[%s1991_s20 + $0x78] sm:$0xff] %vm739_vm1, %v706_v7  ;;  %v708_v8 = vpop.xlane.xlu0 %707 }
 0x1a2   : > { %756 = vst.msk [vmem:[%s1991_s20 + $0x80] sm:$0xff] %vm739_vm1, %v708_v8 }
 0x1a4   : > { %v710_v9 = vpop.xlane.xlu1 %709 }
 0x1a5   : > { %757 = vst.msk [vmem:[%s1991_s20 + $0x88] sm:$0xff] %vm739_vm1, %v710_v9  ;;  %v712_v10 = vpop.xlane.xlu0 %711 }
 0x1a6   : > { %758 = vst.msk [vmem:[%s1991_s20 + $0x90] sm:$0xff] %vm739_vm1, %v712_v10 }
 0x1a8   : > { %v714_v11 = vpop.xlane.xlu1 %713 }
 0x1a9   : > { %759 = vst.msk [vmem:[%s1991_s20 + $0x98] sm:$0xff] %vm739_vm1, %v714_v11  ;;  %v716_v12 = vpop.xlane.xlu0 %715 }
 0x1aa   : > { %760 = vst.msk [vmem:[%s1991_s20 + $0xa0] sm:$0xff] %vm739_vm1, %v716_v12 }
 0x1ac   : > { %v718_v13 = vpop.xlane.xlu1 %717 }
 0x1ad   : > { %761 = vst.msk [vmem:[%s1991_s20 + $0xa8] sm:$0xff] %vm739_vm1, %v718_v13  ;;  %v720_v14 = vpop.xlane.xlu0 %719 }
 0x1ae   : > { %762 = vst.msk [vmem:[%s1991_s20 + $0xb0] sm:$0xff] %vm739_vm1, %v720_v14 }
 0x1b0   : > { %v722_v15 = vpop.xlane.xlu1 %721 }
 0x1b1   : > { %1626 = shalt.err (!%p1623_p3)
}
 0x1b2   : > { %s1627_s14 = scalar_lea.hbm %s2044_s29, 2048  ;;  %s1631_s18 = scalar_lea.hbm %s2142_s4, 4096 }
 0x1b3   : > { %p1628_p4 = scmp.ne.s32.totalorder %s2044_s29, %s1627_s14  ;;  %p1632_p9 = scmp.lt.u32.totalorder %s2044_s29, %s2142_s4 }
 0x1b4   : > { %p1633_p10 = scmp.lt.u32.totalorder %s1631_s18, %s1627_s14  ;;  %p1635_p12 = scmp.lt.u32.totalorder %s1627_s14, %s2044_s29 }
 0x1b5   : > { %p1629_p7 = pnand %p1628_p4, %p1787_p5 }
 0x1b6   : > { %p1634_p11 = por %p1633_p10, %p1632_p9 }
 0x1b7   : > { %p1630_p8 = pneg %p1629_p7 }
 0x1b8   : > { %p1636_p13 = por %p1635_p12, %p1634_p11 }
 0x1ba   : > { %p1637_p0 = pnand %p1636_p13, %p1630_p8 }
 0x1bc   : > { %1640 = shalt.err (!%p1637_p0)
}
 0x1bd   : > { %s1710_s11 = smov 64   ;;  %s1711_s25 = smov 4   ;;  %763 = vst.msk [vmem:[%s1991_s20 + $0xb8] sm:$0xff] %vm739_vm1, %v722_v15  ;;  %v724_v16 = vpop.xlane.xlu0 %723  ;;  %v726_v17 = vpop.xlane.xlu1 %725  ;;  %v1712_v24 = vmov 1966171168   ;;  %v850_v26 = vlaneseq }
 0x1be   : > { %1566 = dma.vmem_to_hbm [thread:$0]  (%p1787_p5), %s2046_s19, 2048, %s2044_s29, %s1028_s9, %s1710_s11, %s1710_s11, %s1711_s25   ;;  %v848_v25 = vunpack.c.l.s4 %v1712_v24 }
 0x1bf   : > { %764 = vst.msk [vmem:[%s1991_s20 + $0xc0] sm:$0xff] %vm739_vm1, %v724_v16  ;;  %765 = vst.msk [vmem:[%s1991_s20 + $0xc8] sm:$0xff] %vm739_vm1, %v726_v17  ;;  %v851_v28 = vshrl.u32 %v850_v26, 7  ;;  %s1193_s19 = sshll.u32 %s1895_s10, 1  ;;  %vm864_vm2 = vcmp.lt.s32.totalorder %v850_v26, 256  ;;  %s2095_s13 = scalar_lea.hbm %s2144_s6, %s1807_s15 }
 0x1c0   : > { %v849_v27 = vunpack.c.0.s8 %v848_v25  ;;  %s263_s29 = scalar_lea.vmem [#allocation4], %s1193_s19  ;;  %s1038_s14 = scalar_lea.sflag [#allocation5], %s1895_s10 }
 0x1c1   : > { %v728_v18 = vpop.xlane.xlu0 %727  ;;  %v730_v19 = vpop.xlane.xlu1 %729  ;;  %s1072_s9 = sshll.u32 %s263_s29, 4  ;;  %s1713_s17 = smov [#allocation4]   ;;  %s2097_s9 = int_to_ptr.vmem [resolvable:$true] %s1072_s9 }
 0x1c2   : > { %766 = vst.msk [vmem:[%s1991_s20 + $0xd0] sm:$0xff] %vm739_vm1, %v728_v18  ;;  %767 = vst.msk [vmem:[%s1991_s20 + $0xd8] sm:$0xff] %vm739_vm1, %v730_v19  ;;  %v852_v30 = vsub.s32 %v849_v27, %v851_v28  ;;  %s1641_s16 = scalar_lea.vmem %s2097_s9, 32  ;;  %s1645_s18 = sshll.u32 %s1713_s17, 4  ;;  %s1646_s18 = int_to_ptr.vmem [resolvable:$false] %s1645_s18 }
 0x1c3   : > { %p1642_p1 = scmp.ne.s32.totalorder %s2097_s9, %s1641_s16  ;;  %s1647_s26 = scalar_lea.vmem %s1646_s18, 64 }
 0x1c4   : > { %p1648_p4 = scmp.lt.s32.totalorder %s2097_s9, %s1646_s18  ;;  %p1649_p7 = scmp.lt.s32.totalorder %s1647_s26, %s1641_s16 }
 0x1c5   : > { %v732_v20 = vpop.xlane.xlu0 %731  ;;  %v734_v21 = vpop.xlane.xlu1 %733  ;;  %p1643_p2 = pnand %p1642_p1, %p1787_p5 }
 0x1c6   : > { %768 = vst.msk [vmem:[%s1991_s20 + $0xe0] sm:$0xff] %vm739_vm1, %v732_v20  ;;  %769 = vst.msk [vmem:[%s1991_s20 + $0xe8] sm:$0xff] %vm739_vm1, %v734_v21  ;;  %p1650_p8 = por %p1649_p7, %p1648_p4 }
 0x1c7   : > { %p1644_p3 = pneg %p1643_p2 }
 0x1c9   : > { %v736_v22 = vpop.xlane.xlu0 %735  ;;  %v738_v23 = vpop.xlane.xlu1 %737  ;;  %p1651_p9 = pnand %p1650_p8, %p1644_p3 }
 0x1ca   : > { %770 = vst.msk [vmem:[%s1991_s20 + $0xf0] sm:$0xff] %vm739_vm1, %v736_v22  ;;  %771 = vst.msk [vmem:[%s1991_s20 + $0xf8] sm:$0xff] %vm739_vm1, %v738_v23 }
 0x227   : > { %v839_v29 = vpop.f32.mrb[0].mxu1 }
 0x228   : > { %v841_v31 = vpop.f32.mrb[1].mxu1 }
 0x229   : > { %v846_v32 = vcombine.low %v839_v29, %v841_v31 }
 0x22b   : > { %v853_v33 = vrot.slane %v846_v32, %v852_v30 }
 0x22d   : > { %v860_v34 = vrot.slane %v853_v33, %v852_v30 }
 0x22f   : > { %866 = vst.msk [vmem:[%s263_s29] sm:$0x3] %vm864_vm2, %v860_v34 }
 0x230   : > { %1654 = shalt.err (!%p1651_p9)
}
 0x231   : > { %s1655_s15 = scalar_lea.hbm %s2095_s13, 32  ;;  %s1659_s11 = scalar_lea.hbm %s2144_s6, 64 }
 0x232   : > { %p1656_p10 = scmp.ne.s32.totalorder %s2095_s13, %s1655_s15  ;;  %p1660_p13 = scmp.lt.u32.totalorder %s2095_s13, %s2144_s6 }
 0x233   : > { %p1661_p0 = scmp.lt.u32.totalorder %s1659_s11, %s1655_s15  ;;  %p1663_p2 = scmp.lt.u32.totalorder %s1655_s15, %s2095_s13 }
 0x234   : > { %p1657_p11 = pnand %p1656_p10, %p1787_p5 }
 0x235   : > { %p1662_p1 = por %p1661_p0, %p1660_p13 }
 0x236   : > { %p1658_p12 = pneg %p1657_p11 }
 0x237   : > { %p1664_p3 = por %p1663_p2, %p1662_p1 }
 0x239   : > { %p1665_p4 = pnand %p1664_p3, %p1658_p12 }
 0x23b   : > { %1668 = shalt.err (!%p1665_p4)
}
 0x23c   : > { %1567 = dma.vmem_to_hbm [thread:$0]  (%p1787_p5), %s2097_s9, 32, %s2095_s13, %s1038_s14  }
 0x23d PF: > { %p1577_p7 = scmp.ge.s32.totalorder %s1707_s24, 2  ;;  %s1084_s29 = sand.u32 1, %s1695_s21  }
 0x23e   : > { %s1085_s12 = scalar_lea.sflag [#allocation3], %s1084_s29 }
 0x23f   : > { %p1571_p8 = pnand %p1577_p7, %p1791_p6 }
 0x241   : > { %1686 = dma.done.wait (!%p1571_p8), %s1085_s12, 2048  }
 0x242   : > { %1688 = vsyncadd (!%p1571_p8), %s1085_s12, 4294965248  ;;  %s1102_s20 = scalar_lea.sflag [#allocation5], %s1084_s29 }
 0x243   : > { %1690 = dma.done.wait (!%p1571_p8), %s1102_s20, 32  }
 0x244   : > { %1692 = vsyncadd (!%p1571_p8), %s1102_s20, 4294967264  ;;  %p20_p5 = scmp.ge.s32.totalorder %s1774_s27, 4   ;;  %s2147_s21 = smov %s1699_s22 }
 0x245   : > { %s2148_s22 = smov %s1703_s23  ;;  %s2149_s23 = smov %s1785_s30 }
 0x246   : > { %s2150_s24 = smov %s1774_s27  ;;  %22 = sbr.rel (!%p20_p5) target bundleno = 5 (0x5), region = 100 }
 0x24d   :  { %1107 = vsyncpa [#allocation3], 1 }
 0x24e   :  { %1109 = vsyncpa [#allocation3 + $0x1], 1 }
 0x24f   :  { %1110 = vsyncpa [#allocation5], 1 }
 0x250   :  { %1112 = vsyncpa [#allocation5 + $0x1], 1 }

</bundles_post_ra>
